<compile_context>
chip_gen: v6e
topology: v6e:2x2x1
jax: 0.10.0
libtpu: 0.0.40
codegen_flags: <defaults>
</compile_context>

<pallas_src>
import math
from functools import partial

import jax
import jax.numpy as jnp
from jax.experimental import pallas as pl
from jax.experimental.pallas import tpu as pltpu


def _device_kind():
    try:
        return jax.devices()[0].device_kind.lower()
    except Exception:
        return ""


def _vmem_capacity_bytes():
    """Per-core VMEM capacity with a device-kind keyed fallback (do not
    silently halve the v5e/v6e budget when the query path fails)."""
    try:
        cap = int(pltpu.get_tpu_info().vmem_capacity_bytes)
        if cap >= (8 << 20):
            return cap
    except Exception:
        pass
    kind = _device_kind()
    if "v7" in kind:
        return 64 << 20
    if any(t in kind for t in ("v4", "v5", "v6")):
        return 128 << 20
    return 64 << 20            # unknown chip: stay conservative


def _tensorcores_per_chip():
    # v7x exposes 2 TensorCores per chip; v5e/v6e have one.
    return 2 if "v7" in _device_kind() else 1


def _channel_gate(means, taps, *, sigmoid):
    """ECA channel gate: 1-D cross-correlation (zero pad k//2) + activation.

    means: (..., C, 1) f32 per-channel spatial means (channels on sublanes).
    taps:  list of k scalar conv weights (PyTorch Conv1d cross-correlation).
    Pure value computation (k static shifted FMAs, O(C*k)) -- usable both
    inside a Pallas kernel and as a tiny JAX op between kernels.
    """
    k = len(taps)
    pad = k // 2
    c = means.shape[-2]
    pad_widths = [(0, 0)] * (means.ndim - 2) + [(pad, pad), (0, 0)]
    mp = jnp.pad(means, pad_widths)
    conv = taps[0] * jax.lax.slice_in_dim(mp, 0, c, axis=-2)
    for j in range(1, k):                   # k is tiny and static
        conv = conv + taps[j] * jax.lax.slice_in_dim(mp, j, j + c, axis=-2)
    if sigmoid:
        return jax.nn.sigmoid(conv)
    return jnp.clip(conv + 3.0, 0.0, 6.0) * (1.0 / 6.0)    # h_sigmoid


# ---------------------------------------------------------------------------
# Fused single-slab kernel: one (C, HW) slab per grid step (1 read + 1 write).
# ---------------------------------------------------------------------------
def _eca_fused_kernel(w_ref, x_ref, o_ref, *, k, inv_hw, sigmoid):
    # Global average pool: f32 accumulation over lanes (no f32 slab copy).
    sums = jnp.sum(x_ref[0], axis=1, keepdims=True, dtype=jnp.float32)   # (C, 1)
    taps = [w_ref[0, j] for j in range(k)]
    gate = _channel_gate(sums * inv_hw, taps, sigmoid=sigmoid)           # (C, 1) f32
    # Re-index x_ref (instead of holding the slab live through the gate chain)
    # so the pool loop and the multiply/store loop stay independent.
    o_ref[0] = (x_ref[0] * gate.astype(o_ref.dtype)).astype(o_ref.dtype)


# ---------------------------------------------------------------------------
# Chunked two-pass path for slabs that do not fit the VMEM budget
# (or to use both v7x TensorCores when B == 1).
# ---------------------------------------------------------------------------
def _eca_pool_kernel(x_ref, psum_ref, *, hw, hw_tile, n_tiles, n_hw, needs_mask):
    """Pass 1: per-(batch, split) partial spatial sums, f32 accumulator lives
    in the output block across the (arbitrary) inner HW-tile axis."""
    h = pl.program_id(2)

    @pl.when(h == 0)
    def _():
        psum_ref[...] = jnp.zeros_like(psum_ref)

    if needs_mask:
        s = pl.program_id(1)
        tile_id = s * n_hw + h
        start = jnp.minimum(tile_id, n_tiles - 1) * hw_tile
        lane = jax.lax.broadcasted_iota(jnp.int32, x_ref[0].shape, 1)
        valid = jnp.logical_and(lane + start < hw, tile_id < n_tiles)
        x = jnp.where(valid, x_ref[0], jnp.zeros_like(x_ref[0]))
    else:
        x = x_ref[0]
    psum_ref[0, 0] += jnp.sum(x, axis=1, keepdims=True, dtype=jnp.float32)


def _eca_scale_kernel(g_ref, x_ref, o_ref):
    """Pass 2: streamed channel-wise rescale."""
    gate = g_ref[0].astype(o_ref.dtype)                  # (C, 1), broadcast over lanes
    o_ref[0] = (x_ref[0] * gate).astype(o_ref.dtype)


# ---------------------------------------------------------------------------
# Wrapper
# ---------------------------------------------------------------------------
def eca_layer(x, conv_weight, *, sigmoid=True, in_place=False,
              force_hw_tile=None, force_split=None):
    """x: (B, C, H, W) NCHW; conv_weight: (1, 1, k) (PyTorch Conv1d weight)."""
    B, C, H, W = x.shape
    k = int(conv_weight.shape[-1])
    HW = H * W
    dsize = x.dtype.itemsize
    inv_hw = 1.0 / float(HW)
    elems = B * C * HW

    vmem_cap = _vmem_capacity_bytes()
    usable = max(vmem_cap - (12 << 20), 16 << 20)   # fixed headroom for compiler scratch

    slab_bytes = C * HW * dsize
    fused_need = 4 * slab_bytes + (1 << 20)         # in + out, both double-buffered

    n_cores = _tensorcores_per_chip()
    # v7x: for a single big slab the fused grid=(B,) strands the second core;
    # the split two-pass path (~1.5x traffic on 2x streaming BW) is faster.
    prefer_split = (n_cores >= 2) and (B < n_cores) and (slab_bytes >= (8 << 20))

    use_fused = (force_hw_tile is None and force_split is None
                 and fused_need <= usable and not prefer_split)

    x2 = x.reshape(B, C, HW)        # free: merges contiguous trailing dims

    if use_fused:
        w_smem = conv_weight.reshape(1, k).astype(jnp.float32)
        aliases = {1: 0} if in_place else {}
        out = pl.pallas_call(
            partial(_eca_fused_kernel, k=k, inv_hw=inv_hw, sigmoid=sigmoid),
            out_shape=jax.ShapeDtypeStruct((B, C, HW), x.dtype),
            grid_spec=pltpu.PrefetchScalarGridSpec(
                num_scalar_prefetch=0,
                grid=(B,),
                in_specs=[
                    pl.BlockSpec(memory_space=pltpu.MemorySpace.SMEM),   # conv taps
                    # Full (C, HW) block: (8,128) rule waived when block == array
                    # dims, so ragged HW needs no HBM-side pad/slice.
                    pl.BlockSpec((1, C, HW), lambda b: (b, 0, 0)),
                ],
                out_specs=pl.BlockSpec((1, C, HW), lambda b: (b, 0, 0)),
            ),
            compiler_params=pltpu.CompilerParams(
                dimension_semantics=("parallel",),
                vmem_limit_bytes=int(min(vmem_cap, fused_need + (8 << 20)))),
            cost_estimate=pl.CostEstimate(
                flops=2 * elems, transcendentals=B * C,
                bytes_accessed=2 * elems * dsize),
            input_output_aliases=aliases,
        )(w_smem, x2)
        return out.reshape(B, C, H, W)

    # ------------------------- chunked two-pass path -------------------------
    if force_hw_tile is not None:
        hw_tile = max(128, (int(force_hw_tile) // 128) * 128)
    else:
        budget = max(128, (usable // (4 * C * dsize)) // 128 * 128)
        hw_tile = int(min(2048, budget, max(128, -(-HW // 128) * 128)))
    n_tiles = -(-HW // hw_tile)

    if force_split is not None:
        n_split = max(1, int(force_split))
    else:
        n_split = n_cores if (B < n_cores) else 1
    n_split = min(n_split, n_tiles)
    n_hw = -(-n_tiles // n_split)
    needs_mask = (HW % hw_tile != 0) or (n_split * n_hw != n_tiles)
    tile_bytes = C * hw_tile * dsize

    # Pass 1: streamed partial spatial sums (grid parallel over B and split,
    # reduction axis last).  The x index_map clamps duplicate block indices so
    # no DMA ever runs out of bounds; duplicates are fully masked in-kernel.
    psums = pl.pallas_call(
        partial(_eca_pool_kernel, hw=HW, hw_tile=hw_tile, n_tiles=n_tiles,
                n_hw=n_hw, needs_mask=needs_mask),
        out_shape=jax.ShapeDtypeStruct((B, n_split, C, 1), jnp.float32),
        grid_spec=pltpu.PrefetchScalarGridSpec(
            num_scalar_prefetch=0,
            grid=(B, n_split, n_hw),
            in_specs=[pl.BlockSpec(
                (1, C, hw_tile),
                lambda b, s, h: (b, 0, jnp.minimum(s * n_hw + h, n_tiles - 1)))],
            out_specs=pl.BlockSpec((1, 1, C, 1), lambda b, s, h: (b, s, 0, 0)),
        ),
        compiler_params=pltpu.CompilerParams(
            dimension_semantics=("parallel", "parallel", "arbitrary"),
            vmem_limit_bytes=int(min(vmem_cap, 2 * tile_bytes + (8 << 20)))),
        cost_estimate=pl.CostEstimate(
            flops=elems, transcendentals=0,
            bytes_accessed=elems * dsize + B * n_split * C * 4),
    )(x2)

    # Tiny (B, C) gate: combine partial sums, channel conv + activation (O(B*C*k)).
    w_flat = conv_weight.reshape(-1).astype(jnp.float32)
    taps = [w_flat[j] for j in range(k)]
    means = jnp.sum(psums, axis=1) * inv_hw               # (B, C, 1) f32
    gates = _channel_gate(means, taps, sigmoid=sigmoid)   # (B, C, 1) f32

    # Pass 2: streamed channel-wise rescale (fully parallel grid; ragged tail
    # writes beyond HW are dropped by the pipeline writeback).
    out = pl.pallas_call(
        _eca_scale_kernel,
        out_shape=jax.ShapeDtypeStruct((B, C, HW), x.dtype),
        grid_spec=pltpu.PrefetchScalarGridSpec(
            num_scalar_prefetch=0,
            grid=(B, n_tiles),
            in_specs=[
                pl.BlockSpec((1, C, 1), lambda b, h: (b, 0, 0)),
                pl.BlockSpec((1, C, hw_tile), lambda b, h: (b, 0, h)),
            ],
            out_specs=pl.BlockSpec((1, C, hw_tile), lambda b, h: (b, 0, h)),
        ),
        compiler_params=pltpu.CompilerParams(
            dimension_semantics=("parallel", "parallel"),
            vmem_limit_bytes=int(min(vmem_cap, 4 * tile_bytes + (8 << 20)))),
        cost_estimate=pl.CostEstimate(
            flops=elems, transcendentals=0,
            bytes_accessed=2 * elems * dsize + B * C * 4),
    )(gates, x2)
    return out.reshape(B, C, H, W)


if __name__ == "__main__":
    def eca_ref(x, w, sigmoid=True):
        k = w.shape[-1]
        pad = k // 2
        C = x.shape[1]
        xf = x.astype(jnp.float32)
        y = xf.mean(axis=(2, 3))                                  # (B, C)
        y_pad = jnp.pad(y, ((0, 0), (pad, pad)))
        wt = w.reshape(k).astype(jnp.float32)
        conv = sum(wt[j] * y_pad[:, j:j + C] for j in range(k))   # cross-correlation
        g = jax.nn.sigmoid(conv) if sigmoid else jnp.clip(conv + 3.0, 0.0, 6.0) / 6.0
        return (xf * g[:, :, None, None]).astype(x.dtype)

    # ECA kernel-size rule from the PyTorch __init__ (gamma=2, b=1): C=16 -> k=3.
    gamma, b_ = 2, 1
    C = 16
    t = int(abs((math.log(C, 2) + b_) / gamma))
    k = t if t % 2 else t + 1

    key = jax.random.PRNGKey(0)
    kx1, kx2, kx3, kw = jax.random.split(key, 4)
    wgt = 0.5 * jax.random.normal(kw, (1, 1, k), dtype=jnp.float32)

    # 1) Fused single-slab path, HW a multiple of 128.
    x1 = jax.random.normal(kx1, (2, C, 16, 16), dtype=jnp.float32)
    out1 = jax.block_until_ready(eca_layer(x1, wgt))
    assert out1.shape == x1.shape and out1.dtype == x1.dtype
    assert jnp.allclose(out1, eca_ref(x1, wgt), atol=1e-5, rtol=1e-5)

    # 2) Fused path, ragged spatial size (14x14 -> HW=196), no HBM padding.
    x2 = jax.random.normal(kx2, (2, C, 14, 14), dtype=jnp.float32)
    out2 = jax.block_until_ready(eca_layer(x2, wgt))
    assert jnp.allclose(out2, eca_ref(x2, wgt), atol=1e-5, rtol=1e-5)

    # 3) Forced chunked two-pass path, even tiling (HW=256, tile=128).
    out3 = jax.block_until_ready(eca_layer(x1, wgt, force_hw_tile=128))
    assert jnp.allclose(out3, eca_ref(x1, wgt), atol=1e-5, rtol=1e-5)

    # 4) Chunked path with a masked ragged tail (HW=196, tile=128).
    out4 = jax.block_until_ready(eca_layer(x2, wgt, force_hw_tile=128))
    assert jnp.allclose(out4, eca_ref(x2, wgt), atol=1e-5, rtol=1e-5)

    # 5) Chunked path with a core-split pool pass (HW=324 -> 3 tiles, split=2:
    #    one fully-masked duplicate block exercises the clamped index_map).
    x3 = jax.random.normal(kx3, (1, C, 18, 18), dtype=jnp.float32)
    out5 = jax.block_until_ready(
        eca_layer(x3, wgt, force_hw_tile=128, force_split=2))
    assert jnp.allclose(out5, eca_ref(x3, wgt), atol=1e-5, rtol=1e-5)

    # 6) h_sigmoid gate variant (module's sigmoid=False branch).
    out6 = jax.block_until_ready(eca_layer(x1, wgt, sigmoid=False))
    assert jnp.allclose(out6, eca_ref(x1, wgt, sigmoid=False), atol=1e-5, rtol=1e-5)

    # 7) bf16 input (rescale runs in bf16 -> looser tolerance).
    x1b = x1.astype(jnp.bfloat16)
    out7 = jax.block_until_ready(eca_layer(x1b, wgt))
    assert out7.dtype == jnp.bfloat16
    assert jnp.allclose(out7.astype(jnp.float32),
                        eca_ref(x1b, wgt).astype(jnp.float32),
                        atol=2e-2, rtol=2e-2)

    print("KERNEL_OK")
</pallas_src>

<mosaic_0001>
module attributes {stable_mosaic.version = 11 : i64} {
  func.func @_eca_fused_kernel(%arg0: i32, %arg1: memref<1x3xf32, #tpu.memory_space<smem>>, %arg2: memref<1x16x256xf32, #tpu.memory_space<vmem>>, %arg3: memref<1x16x256xf32, #tpu.memory_space<vmem>>) attributes {dimension_semantics = [#tpu.dimension_semantics<parallel>], iteration_bounds = array<i64: 2>, scalar_prefetch = 0 : i64, scratch_operands = 0 : i64, tpu.core_type = #tpu.core_type<tc>, window_params = [{transform_indices = @transform_0, window_bounds = array<i64: 1, 3>}, {transform_indices = @transform_1, window_bounds = array<i64: 1, 16, 256>}, {transform_indices = @transform_2, window_bounds = array<i64: 1, 16, 256>}]} {
    %c0 = arith.constant 0 : index
    %c0_0 = arith.constant 0 : index
    %c0_1 = arith.constant 0 : index
    %0 = vector.load %arg2[%c0, %c0_0, %c0_1] : memref<1x16x256xf32, #tpu.memory_space<vmem>>, vector<1x16x256xf32>
    %1 = vector.shape_cast %0 : vector<1x16x256xf32> to vector<16x256xf32>
    %cst = arith.constant dense<0.000000e+00> : vector<16xf32>
    %2 = vector.multi_reduction <add>, %1, %cst [1] : vector<16x256xf32> to vector<16xf32>
    %3 = vector.shape_cast %2 : vector<16xf32> to vector<16x1xf32>
    %c0_2 = arith.constant 0 : index
    %c0_3 = arith.constant 0 : index
    %4 = memref.load %arg1[%c0_2, %c0_3] : memref<1x3xf32, #tpu.memory_space<smem>>
    %c0_4 = arith.constant 0 : index
    %c1 = arith.constant 1 : index
    %5 = memref.load %arg1[%c0_4, %c1] : memref<1x3xf32, #tpu.memory_space<smem>>
    %c0_5 = arith.constant 0 : index
    %c2 = arith.constant 2 : index
    %6 = memref.load %arg1[%c0_5, %c2] : memref<1x3xf32, #tpu.memory_space<smem>>
    %cst_6 = arith.constant 3.906250e-03 : f32
    %7 = vector.broadcast %cst_6 : f32 to vector<16x1xf32>
    %8 = arith.mulf %3, %7 : vector<16x1xf32>
    %c0_i32 = arith.constant 0 : i32
    %9 = arith.sitofp %c0_i32 : i32 to f32
    %10 = vector.broadcast %9 : f32 to vector<1x1xf32>
    %11 = tpu.concatenate %10, %8 in 0 : vector<1x1xf32>, vector<16x1xf32> -> vector<17x1xf32>
    %12 = vector.broadcast %9 : f32 to vector<1x1xf32>
    %13 = tpu.concatenate %11, %12 in 0 : vector<17x1xf32>, vector<1x1xf32> -> vector<18x1xf32>
    %14 = vector.extract_strided_slice %13 {offsets = [0, 0], sizes = [16, 1], strides = [1, 1]} : vector<18x1xf32> to vector<16x1xf32>
    %15 = vector.broadcast %4 : f32 to vector<16x1xf32>
    %16 = arith.mulf %15, %14 : vector<16x1xf32>
    %17 = vector.extract_strided_slice %13 {offsets = [1, 0], sizes = [16, 1], strides = [1, 1]} : vector<18x1xf32> to vector<16x1xf32>
    %18 = vector.broadcast %5 : f32 to vector<16x1xf32>
    %19 = arith.mulf %18, %17 : vector<16x1xf32>
    %20 = arith.addf %16, %19 : vector<16x1xf32>
    %21 = vector.extract_strided_slice %13 {offsets = [2, 0], sizes = [16, 1], strides = [1, 1]} : vector<18x1xf32> to vector<16x1xf32>
    %22 = vector.broadcast %6 : f32 to vector<16x1xf32>
    %23 = arith.mulf %22, %21 : vector<16x1xf32>
    %24 = arith.addf %20, %23 : vector<16x1xf32>
    %25 = arith.negf %24 : vector<16x1xf32>
    %26 = math.exp %25 : vector<16x1xf32>
    %cst_7 = arith.constant 1.000000e+00 : f32
    %27 = vector.broadcast %cst_7 : f32 to vector<16x1xf32>
    %28 = arith.addf %27, %26 : vector<16x1xf32>
    %29 = arith.divf %27, %28 : vector<16x1xf32>
    %c0_8 = arith.constant 0 : index
    %c0_9 = arith.constant 0 : index
    %c0_10 = arith.constant 0 : index
    %30 = vector.load %arg2[%c0_8, %c0_9, %c0_10] : memref<1x16x256xf32, #tpu.memory_space<vmem>>, vector<1x16x256xf32>
    %31 = vector.shape_cast %30 : vector<1x16x256xf32> to vector<16x256xf32>
    %32 = vector.broadcast %29 : vector<16x1xf32> to vector<16x256xf32>
    %33 = arith.mulf %31, %32 : vector<16x256xf32>
    %c0_11 = arith.constant 0 : index
    %c0_12 = arith.constant 0 : index
    %c0_13 = arith.constant 0 : index
    %34 = vector.load %arg3[%c0_11, %c0_12, %c0_13] : memref<1x16x256xf32, #tpu.memory_space<vmem>>, vector<1x16x256xf32>
    %35 = vector.shape_cast %34 : vector<1x16x256xf32> to vector<16x256xf32>
    %36 = vector.shape_cast %33 : vector<16x256xf32> to vector<1x16x256xf32>
    tpu.vector_store %arg3[%c0_11, %c0_12, %c0_13], %36 {strides = array<i32>} : memref<1x16x256xf32, #tpu.memory_space<vmem>>, vector<1x16x256xf32>,
    return
  }
  func.func @transform_0(%arg0: i32) -> (i32, i32) {
    %c0_i32 = arith.constant 0 : i32
    %c0_i32_0 = arith.constant 0 : i32
    %c0_i32_1 = arith.constant 0 : i32
    return %c0_i32, %c0_i32_0 : i32, i32
  }
  func.func @transform_1(%arg0: i32) -> (i32, i32, i32) {
    %c0_i32 = arith.constant 0 : i32
    %c0_i32_0 = arith.constant 0 : i32
    %c0_i32_1 = arith.constant 0 : i32
    return %arg0, %c0_i32, %c0_i32_0 : i32, i32, i32
  }
  func.func @transform_2(%arg0: i32) -> (i32, i32, i32) {
    %c0_i32 = arith.constant 0 : i32
    %c0_i32_0 = arith.constant 0 : i32
    %c0_i32_1 = arith.constant 0 : i32
    return %arg0, %c0_i32, %c0_i32_0 : i32, i32, i32
  }
}

</mosaic_0001>

<bundles_post_ra>
// kernel: tpu_custom_call.1
= control target key start
LH: loop header
LB: loop body
LE: loop exit
PB: predicated region body
PF: predicated region fallthrough
CT: control target
= control target key end

     0   :  { %7 = vsyncpa [#allocation5], 0  ;;  %s785_s0 = inlined_call_operand.hbm [shape: f32[1,3], index: 0, kind: input, shape index: {}]   ;;  %s786_s1 = inlined_call_operand.hbm [shape: f32[2,16,256], index: 1, kind: input, shape index: {}]   ;;  %s787_s2 = inlined_call_operand.hbm [shape: f32[2,16,256], index: 2, kind: output, shape index: {}]  }
   0x1   :  { %8 = vsyncpa [#allocation3], 0 }
   0x2   :  { %10 = vsyncpa [#allocation3 + $0x1], 0 }
   0x3   :  { %11 = vsyncpa [#allocation4], 0 }
   0x4   :  { %13 = vsyncpa [#allocation4 + $0x1], 0  ;;  %s592_s9 = smov 0   ;;  %s594_s10 = smov 0  }
   0x5   :  { %s596_s11 = smov 0   ;;  %s598_s12 = smov 0  }
   0x6 LB: > { %s613_s13 = sadd.s32 4294967295, %s567_s12   ;;  %s366_s14 = sadd.s32 4294967294, %s567_s12   ;;  %s567_s12 = sphi %s598_s12, %s809_s12   ;;  %s563_s11 = sphi %s596_s11, %s808_s11   ;;  %s559_s10 = sphi %s594_s10, %s807_s10   ;;  %s555_s9 = sphi %s592_s9, %s806_s9  }
   0x7   : > { %s617_s15 = sadd.s32 1, %s567_s12   ;;  %s47_s16 = sadd.s32 1, %s563_s11 }
   0x8   : > { %s44_s17 = ssub.s32 %s567_s12, %s617_s15  ;;  %p54_p0 = scmp.ne.s32.totalorder %s563_s11, %s559_s10 }
   0x9   : > { %p45_p1 = scmp.eq.s32.totalorder %s44_s17, 0  ;;  %p55_p2 = scmp.eq.s32.totalorder %s567_s12, 0 }
   0xa   : > { %p60_p3 = scmp.ne.s32.totalorder %s559_s10, %s555_s9  ;;  %p788_p4 = scmp.eq.s32.totalorder %s613_s13, 0 }
   0xb   : > { %s629_s18 = scalar_select %p45_p1, %s563_s11, %s47_s16  }
   0xc   : > { %p631_p5 = por %p55_p2, %p54_p0  ;;  %p637_p6 = por %p788_p4, %p60_p3 }
   0xd   : > { %p84_p7 = scmp.eq.s32.totalorder %s613_s13, 1  ;;  %p90_p8 = scmp.eq.s32.totalorder %s366_s14, 1 }
   0xe   : > { %s793_s20 = scalar_select %p637_p6, 1, 0 }
   0xf   : > { %p367_p9 = scmp.ge.s32.totalorder %s567_s12, 1  ;;  %p97_p10 = scmp.lt.s32.totalorder %s567_s12, 3 }
  0x10   : > { %p644_p11 = por %p84_p7, %p54_p0  ;;  %p648_p12 = por %p90_p8, %p60_p3 }
  0x11   : > { %p652_p13 = pnand %p367_p9, %p97_p10  ;;  %p409_p4 = scmp.lt.s32.totalorder %s567_s12, 2 }
  0x12   : > { %s794_s21 = scalar_select %p644_p11, 1, 0 }
  0x13   : > { %s795_s22 = scalar_select %p648_p12, 1, 0 }
  0x14   : > { %s796_s23 = scalar_select %p652_p13, 1, 0 }
  0x15   : > { %p396_p2 = pneg %p652_p13  ;;  %s119_s24 = sand.u32 1, %s563_s11  }
  0x16   : > { %s386_s25 = sshll.u32 %s567_s12, 9  ;;  %p797_p6 = scmp.eq.s32.totalorder %s613_s13, 0 }
  0x17   : > { %p666_p7 = pnand %p409_p4, %p631_p5  ;;  %s370_s27 = sshll.u32 %s119_s24, 5 }
  0x18   : > { %p397_p0 = pnand %p396_p2, %p797_p6  ;;  %s569_s28 = smov [#allocation2]  }
  0x19   : > { %s676_s5 = scalar_lea.hbm %s786_s1, %s386_s25  ;;  %s123_s6 = scalar_lea.vmem [#allocation6], %s370_s27 }
  0x1a   : > { %399 = dma.hbm_to_smem (!%p397_p0), %s785_s0, 16, %s569_s28, [#allocation5]  }
  0x1b   : > { %s130_s7 = sshll.u32 %s123_s6, 4  ;;  %s680_s8 = scalar_lea.sflag [#allocation3], %s119_s24  ;;  %s678_s7 = int_to_ptr.vmem [resolvable:$true] %s130_s7 }
  0x1c   : > { %s471_s14 = scalar_lea.hbm %s676_s5, 512  ;;  %p473_p4 = pneg %p666_p7 }
  0x1d   : > { %p472_p3 = scmp.ne.s32.totalorder %s676_s5, %s471_s14  ;;  %s476_s19 = scalar_lea.hbm %s786_s1, 1024 }
  0x1e   : > { %p477_p8 = scmp.lt.s32.totalorder %s676_s5, %s786_s1  ;;  %p478_p9 = scmp.lt.s32.totalorder %s476_s19, %s471_s14 }
  0x1f   : > { %p474_p5 = pnand %p473_p4, %p472_p3 }
  0x20   : > { %p479_p10 = por %p478_p9, %p477_p8 }
  0x21   : > { %p475_p6 = pneg %p474_p5 }
  0x23   : > { %p480_p2 = pnand %p479_p10, %p475_p6 }
  0x25   : > { %483 = shalt.err (!%p480_p2)
}
  0x26   : > { %s484_s24 = scalar_lea.vmem %s678_s7, 512  ;;  %s570_s27 = smov [#allocation6]  }
  0x27   : > { %p485_p0 = scmp.ne.s32.totalorder %s678_s7, %s484_s24  ;;  %s489_s29 = sshll.u32 %s570_s27, 4  ;;  %s490_s29 = int_to_ptr.vmem [resolvable:$false] %s489_s29 }
  0x28   : > { %s491_s30 = scalar_lea.vmem %s490_s29, 1024  ;;  %p492_p5 = scmp.lt.s32.totalorder %s678_s7, %s490_s29 }
  0x29   : > { %p487_p1 = pnand %p485_p0, %p473_p4  ;;  %p493_p12 = scmp.lt.s32.totalorder %s491_s30, %s484_s24 }
  0x2b   : > { %p488_p3 = pneg %p487_p1  ;;  %p494_p11 = por %p493_p12, %p492_p5 }
  0x2d   : > { %p495_p13 = pnand %p494_p11, %p488_p3 }
  0x2f   : > { %498 = shalt.err (!%p495_p13)
}
  0x30   : > { %s571_s3 = smov 256   ;;  %s572_s4 = smov 16  }
  0x31   : > { %403 = dma.hbm_to_vmem [thread:$0]  (!%p666_p7), %s676_s5, 512, %s678_s7, %s680_s8, %s571_s3, %s571_s3, %s572_s4  }
  0x32   : > { %p799_p4 = scmp.ne.s32.totalorder %s796_s23, 0 }
  0x33   : > { %p800_p1 = scmp.eq.s32.totalorder (!%p799_p4), %s613_s13, 0 }
  0x34   : > { %142 = sbr.rel (%p799_p4) target bundleno = 399 (0x18f), region = 28 }
  0x39   : > { %542 = dma.done.wait (%p800_p1), [#allocation5], 16   ;;  %p801_p6 = pmov %p800_p1 }
  0x3a   : > { %s708_s6 = sand.u32 1, %s559_s10   ;;  %p802_p11 = scmp.ne.s32.totalorder %s793_s20, 0 }
  0x3b   : > { %544 = vsyncadd (%p801_p6), [#allocation5], 4294967280  ;;  %s375_s14 = sshll.u32 %s708_s6, 5  ;;  %s149_s16 = scalar_lea.sflag [#allocation3], %s708_s6 }
  0x3c   : > { %s152_s26 = scalar_lea.vmem [#allocation6], %s375_s14 }
  0x3d   : > { %546 = dma.done.wait (%p802_p11), %s149_s16, 512  }
  0x3e   : > { %548 = vsyncadd (%p802_p11), %s149_s16, 4294966784 }
  0x3f   : > { %157 = sfence }
  0x40   : > { %v718_v0 = vld [vmem:[%s152_s26] sm:$0xff]  ;;  %v720_v1 = vld [vmem:[%s152_s26 + $0x8] sm:$0xff]  ;;  %v722_v2 = vld [vmem:[%s152_s26 + $0x10] sm:$0xff]  ;;  %v573_v6 = vmov 0   ;;  %s377_s20 = sld [smem:[#allocation2 + $0x1]]  ;;  %vm191_vm0 = vcmask 1040384  }
  0x41   : > { %v178_v3 = vadd.f32 %v720_v1, %v718_v0  ;;  %v726_v4 = vld [vmem:[%s152_s26 + $0x18] sm:$0xff]  ;;  %450 = vset.pattern.permute.xlu1 %v573_v6  ;;  %451 = vset.pattern.permute.xlu0 %v573_v6  ;;  %s378_s23 = sld [smem:[#allocation2 + $0x2]]  ;;  %vm210_vm1 = vcmask 1046528   ;;  %vm227_vm2 = vcmask 1045504   ;;  %s173_s7 = scalar_lea.vmem [#allocation7], %s375_s14 }
  0x42   : > { %v181_v5 = vadd.f32 %v726_v4, %v722_v2  ;;  %s184_s5 = sld [smem:[#allocation2]]  ;;  %s281_s8 = sshll.u32 %s173_s7, 4  ;;  %s735_s8 = int_to_ptr.vmem [resolvable:$true] %s281_s8 }
  0x43   : > { %179 = vadd.xlane.f32.xlu0 %v178_v3  ;;  %s387_s17 = sshll.u32 %s613_s13, 9  ;;  %s268_s13 = scalar_lea.sflag [#allocation4], %s708_s6 }
  0x44   : > { %s740_s28 = scalar_lea.hbm %s787_s2, %s387_s17  ;;  %s499_s24 = scalar_lea.vmem %s735_s8, 512 }
  0x45   : > { %p500_p12 = scmp.ne.s32.totalorder %s735_s8, %s499_s24  ;;  %p803_p13 = scmp.ne.s32.totalorder %s794_s21, 0 }
  0x46   : > { %v203_v11 = vstv %s377_s20  ;;  %s574_s27 = smov [#allocation7]  }
  0x47   : > { %182 = vadd.xlane.f32.xlu0 %v181_v5  ;;  %v220_v14 = vstv %s378_s23  ;;  %p501_p7 = pnand %p500_p12, %p803_p13  ;;  %s503_s29 = sshll.u32 %s574_s27, 4  ;;  %s504_s29 = int_to_ptr.vmem [resolvable:$false] %s503_s29 }
  0x48   : > { %v200_v17 = vstv %s184_s5  ;;  %s505_s30 = scalar_lea.vmem %s504_s29, 1024  ;;  %p506_p9 = scmp.lt.s32.totalorder %s735_s8, %s504_s29 }
  0x49   : > { %p502_p8 = pneg %p501_p7  ;;  %p507_p10 = scmp.lt.s32.totalorder %s505_s30, %s499_s24 }
  0x4b   : > { %p508_p2 = por %p507_p10, %p506_p9 }
  0x4d   : > { %p509_p0 = pnand %p508_p2, %p502_p8 }
  0xcc   : > { %v180_v7 = vpop.xlane.xlu0 %179 }
  0xcd   : > { %v187_v8 = vmul.f32 0.00390625, %v180_v7 }
  0xcf   : > { %v192_v9 = vrot.slane %v187_v8, 7 }
  0xd0   : > { %v183_v10 = vpop.xlane.xlu0 %182 }
  0xd1   : > { %v198_v12 = vsel %vm191_vm0, 0.0, %v192_v9  ;;  %v188_v13 = vmul.f32 0.00390625, %v183_v10 }
  0xd2   : > { %v204_v16 = vmul.f32 %v203_v11, %v198_v12  ;;  %v221_v20 = vmul.f32 %v220_v14, %v198_v12  ;;  %v201_v29 = vmul.f32 %v200_v17, %v198_v12 }
  0xd3   : > { %v193_v15 = vrot.slane %v188_v13, 7 }
  0xd4   : > { %v211_v25 = vrot.slane %v204_v16, 1  ;;  %v228_v32 = vrot.slane %v221_v20, 2 }
  0xd5   : > { %v194_v18 = vsel %vm191_vm0, %v192_v9, %v193_v15  ;;  %v199_v19 = vsel %vm191_vm0, %v193_v15, 0.0 }
  0xd6   : > { %v205_v21 = vmul.f32 %v203_v11, %v194_v18  ;;  %v206_v22 = vmul.f32 %v203_v11, %v199_v19  ;;  %v222_v23 = vmul.f32 %v220_v14, %v194_v18  ;;  %v223_v24 = vmul.f32 %v220_v14, %v199_v19 }
  0xd7   : > { %v202_v30 = vmul.f32 %v200_v17, %v194_v18 }
  0xd8   : > { %v212_v26 = vrot.slane %v205_v21, 1  ;;  %v214_v27 = vrot.slane %v206_v22, 1  ;;  %v229_v28 = vrot.slane %v222_v23, 2  ;;  %v231_v31 = vrot.slane %v223_v24, 2 }
  0xda   : > { %v213_v33 = vsel %vm210_vm1, %v211_v25, %v212_v26  ;;  %v215_v34 = vsel %vm210_vm1, %v212_v26, %v214_v27  ;;  %v230_v37 = vsel %vm227_vm2, %v228_v32, %v229_v28  ;;  %v232_v38 = vsel %vm227_vm2, %v229_v28, %v231_v31 }
  0xdb   : > { %v218_v35 = vadd.f32 %v213_v33, %v201_v29  ;;  %v219_v36 = vadd.f32 %v215_v34, %v202_v30 }
  0xdd   : > { %v235_v39 = vadd.f32 %v230_v37, %v218_v35  ;;  %v236_v40 = vadd.f32 %v232_v38, %v219_v36 }
  0xdf   : > { %v379_v41 = vmul.f32 -1.442695, %v235_v39  ;;  %v380_v42 = vmul.f32 -1.442695, %v236_v40 }
  0xe1   : > { %452 = vpow2.f32 %v379_v41 }
  0xe2   : > { %454 = vpow2.f32 %v380_v42 }
  0xee   : > { %v453_v43 = vpop.eup %452 }
  0xef   : > { %v455_v44 = vpop.eup %454  ;;  %v243_v45 = vadd.f32 1.0, %v453_v43 }
  0xf0   : > { %v244_v46 = vadd.f32 1.0, %v455_v44 }
  0xf1   : > { %456 = vrcp.f32 %v243_v45 }
  0xf2   : > { %458 = vrcp.f32 %v244_v46 }
  0xfe   : > { %v457_v47 = vpop.eup %456 }
  0xff   : > { %251 = vperm.xlu1 %450, %v457_v47   ;;  %v459_v48 = vpop.eup %458 }
 0x103   : > { %256 = vperm.xlu1 %450, %v459_v48  }
 0x17a   : > { %v252_v49 = vpop.permute.xlu1 %251 }
 0x17b   : > { %v259_v50 = vmul.f32 %v252_v49, %v718_v0  ;;  %v260_v51 = vmul.f32 %v252_v49, %v720_v1 }
 0x17d   : > { %263 = vst [vmem:[%s173_s7] sm:$0xff] %v259_v50  ;;  %264 = vst [vmem:[%s173_s7 + $0x8] sm:$0xff] %v260_v51 }
 0x17e   : > { %v257_v52 = vpop.permute.xlu1 %256 }
 0x17f   : > { %v261_v53 = vmul.f32 %v257_v52, %v722_v2  ;;  %v262_v54 = vmul.f32 %v257_v52, %v726_v4 }
 0x181   : > { %265 = vst [vmem:[%s173_s7 + $0x10] sm:$0xff] %v261_v53  ;;  %266 = vst [vmem:[%s173_s7 + $0x18] sm:$0xff] %v262_v54 }
 0x182   : > { %512 = shalt.err (!%p509_p0)
}
 0x183   : > { %s513_s3 = scalar_lea.hbm %s740_s28, 512  ;;  %s517_s16 = scalar_lea.hbm %s787_s2, 1024 }
 0x184   : > { %p514_p3 = scmp.ne.s32.totalorder %s740_s28, %s513_s3  ;;  %p518_p1 = scmp.lt.s32.totalorder %s740_s28, %s787_s2 }
 0x185   : > { %p519_p6 = scmp.lt.s32.totalorder %s517_s16, %s513_s3 }
 0x186   : > { %p515_p5 = pnand %p514_p3, %p803_p13 }
 0x187   : > { %p520_p11 = por %p519_p6, %p518_p1 }
 0x188   : > { %p516_p4 = pneg %p515_p5 }
 0x18a   : > { %p521_p12 = pnand %p520_p11, %p516_p4 }
 0x18c   : > { %524 = shalt.err (!%p521_p12)
}
 0x18d   : > { %s575_s23 = smov 256   ;;  %s576_s5 = smov 16  }
 0x18e   : > { %394 = dma.vmem_to_hbm [thread:$0]  (%p803_p13), %s735_s8, 512, %s740_s28, %s268_s13, %s575_s23, %s575_s23, %s576_s5  }
 0x18f PF: > { %s296_s7 = sand.u32 1, %s555_s9   ;;  %p804_p7 = scmp.ne.s32.totalorder %s795_s22, 0 }
 0x190   : > { %p805_p8 = scmp.ge.s32.totalorder %s567_s12, 2  ;;  %s297_s17 = scalar_lea.sflag [#allocation4], %s296_s7 }
 0x192   : > { %p405_p9 = pnand %p805_p8, %p804_p7 }
 0x194   : > { %p406_p10 = pneg %p405_p9 }
 0x196   : > { %550 = dma.done.wait (%p406_p10), %s297_s17, 512  }
 0x197   : > { %552 = vsyncadd (%p406_p10), %s297_s17, 4294966784  ;;  %p16_p2 = scmp.ge.s32.totalorder %s617_s15, 4   ;;  %s806_s9 = smov %s559_s10 }
 0x198   : > { %s807_s10 = smov %s563_s11  ;;  %s808_s11 = smov %s629_s18 }
 0x199   : > { %s809_s12 = smov %s617_s15  ;;  %18 = sbr.rel (!%p16_p2) target bundleno = 6 (0x6), region = 78 }
 0x19e   :  { %302 = vsyncpa [#allocation3], 1 }
 0x19f   :  { %304 = vsyncpa [#allocation3 + $0x1], 1 }
 0x1a0   :  { %305 = vsyncpa [#allocation4], 1 }
 0x1a1   :  { %307 = vsyncpa [#allocation4 + $0x1], 1 }
 0x1a2   :  { %308 = vsyncpa [#allocation5], 1 }
 0x1a3   :  { %310 = vsyncpa [#allocation5 + $0x1], 1 }

</bundles_post_ra>
